<compile_context>
chip_gen: v5e
topology: v5e:2x2
jax: 0.10.0
libtpu: 0.0.40
codegen_flags: <defaults>
</compile_context>

<pallas_src>
import functools

import jax
import jax.numpy as jnp
from jax.experimental import pallas as pl
from jax.experimental.pallas import tpu as pltpu


def _round_up(v, m):
    return ((v + m - 1) // m) * m


def _fc_layer_kernel(x_ref, w_ref, b_ref, o_ref, *, activation):
    """One (ensemble-member, batch-tile) grid step.

    x_ref: (TB, D_in_p)       batch tile of the current ensemble member
    w_ref: (D_in_p, D_out_p)  member weight (resident across batch tiles)
    b_ref: (E, D_out_p)       full bias table (resident across the grid)
    o_ref: (TB, D_out_p)
    """
    e = pl.program_id(0)

    # MXU matmul with f32 accumulation.
    y = jnp.dot(x_ref[...], w_ref[...], preferred_element_type=jnp.float32)

    # Bias row of the current ensemble member: (1, D_out_p), broadcast over rows.
    y = y + b_ref[pl.ds(e, 1), :]

    if activation == "swish":
        y = y * jax.nn.sigmoid(y)        # sigmoid on EUP, mul on VPU (f32 epilogue)
    elif activation == "relu":
        y = jnp.maximum(y, 0.0)
    elif activation == "identity":
        pass
    else:
        raise ValueError(f"unknown activation: {activation}")

    o_ref[...] = y.astype(o_ref.dtype)


def _choose_batch_tile(batch, d_in_p, d_out_p, ensemble, itemsize,
                       vmem_tile_budget=26 * 1024 * 1024, max_tb=1024):
    """Pick a batch tile so double-buffered tiles fit a conservative VMEM budget."""
    fixed = 2 * d_in_p * d_out_p * itemsize + 2 * ensemble * d_out_p * itemsize
    avail = vmem_tile_budget - fixed
    per_row = 2 * (d_in_p + d_out_p) * itemsize  # double-buffered x + out rows
    tb = avail // per_row if avail > 0 else 8
    tb = int(min(tb, max_tb, _round_up(max(batch, 1), 8)))
    tb = max(8, (tb // 8) * 8)                   # sublane-aligned
    return tb


def fc_layer(x, weight, bias, activation="swish"):
    """Ensemble FC layer: activation(bmm(x, weight) + bias[:, None, :])."""
    E, B, D_in = x.shape
    _, _, D_out = weight.shape
    assert weight.shape == (E, D_in, D_out)
    assert bias.shape == (E, D_out)

    dtype = x.dtype
    itemsize = jnp.dtype(dtype).itemsize

    # Lane-dense padding of feature dims; batch padded to the chosen tile.
    d_in_p = _round_up(D_in, 128)
    d_out_p = _round_up(D_out, 128)
    tb = _choose_batch_tile(B, d_in_p, d_out_p, E, itemsize)
    b_p = _round_up(B, tb)

    if (b_p, d_in_p) != (B, D_in):
        x = jnp.pad(x, ((0, 0), (0, b_p - B), (0, d_in_p - D_in)))
    if (d_in_p, d_out_p) != (D_in, D_out):
        weight = jnp.pad(weight, ((0, 0), (0, d_in_p - D_in), (0, d_out_p - D_out)))
    if d_out_p != D_out:
        bias = jnp.pad(bias, ((0, 0), (0, d_out_p - D_out)))

    kernel = functools.partial(_fc_layer_kernel, activation=activation)
    n_b_tiles = b_p // tb

    cost = pl.CostEstimate(
        flops=2 * E * b_p * d_in_p * d_out_p,
        transcendentals=(E * b_p * d_out_p) if activation == "swish" else 0,
        bytes_accessed=itemsize * (E * b_p * d_in_p + E * d_in_p * d_out_p
                                   + E * d_out_p + E * b_p * d_out_p),
    )

    out_p = pl.pallas_call(
        kernel,
        out_shape=jax.ShapeDtypeStruct((E, b_p, d_out_p), dtype),
        grid_spec=pltpu.PrefetchScalarGridSpec(
            num_scalar_prefetch=0,
            grid=(E, n_b_tiles),
            in_specs=[
                # x: one batch tile of one ensemble member.
                pl.BlockSpec((pl.Squeezed(), tb, d_in_p), lambda e, b: (e, b, 0)),
                # weight: same block across the inner batch axis -> stays resident.
                pl.BlockSpec((pl.Squeezed(), d_in_p, d_out_p), lambda e, b: (e, 0, 0)),
                # bias: whole table resident for the entire grid.
                pl.BlockSpec((E, d_out_p), lambda e, b: (0, 0)),
            ],
            out_specs=pl.BlockSpec((pl.Squeezed(), tb, d_out_p), lambda e, b: (e, b, 0)),
        ),
        compiler_params=pltpu.CompilerParams(
            dimension_semantics=("parallel", "parallel"),
            vmem_limit_bytes=32 * 1024 * 1024,
        ),
        cost_estimate=cost,
    )(x, weight, bias)

    if (b_p, d_out_p) != (B, D_out):
        out_p = out_p[:, :B, :D_out]
    return out_p


def fc_layer_reference(x, weight, bias, activation="swish"):
    y = jnp.einsum("ebi,eio->ebo", x, weight) + bias[:, None, :]
    if activation == "swish":
        return y * jax.nn.sigmoid(y)
    elif activation == "relu":
        return jnp.maximum(y, 0.0)
    return y


if __name__ == "__main__":
    # Small shapes: ensemble_size=4, batch=8, input_dim=32, output_dim=32.
    E, B, D_in, D_out = 4, 8, 32, 32

    key = jax.random.PRNGKey(0)
    kx, kw, kb = jax.random.split(key, 3)

    x = jax.random.normal(kx, (E, B, D_in), dtype=jnp.float32)
    weight = jax.random.normal(kw, (E, D_in, D_out), dtype=jnp.float32) / jnp.sqrt(
        2.0 * D_in
    )
    bias = jax.random.normal(kb, (E, D_out), dtype=jnp.float32) * 0.01

    out = fc_layer(x, weight, bias, activation="swish")
    out = jax.block_until_ready(out)

    ref = fc_layer_reference(x, weight, bias, activation="swish")
    assert out.shape == (E, B, D_out)
    assert jnp.allclose(out, ref, atol=1e-5, rtol=1e-5)

    print("KERNEL_OK")
</pallas_src>

<mosaic_0001>
module attributes {stable_mosaic.version = 11 : i64} {
  func.func @_fc_layer_kernel(%arg0: i32, %arg1: i32, %arg2: memref<1x8x128xf32, #tpu.memory_space<vmem>>, %arg3: memref<1x128x128xf32, #tpu.memory_space<vmem>>, %arg4: memref<4x128xf32, #tpu.memory_space<vmem>>, %arg5: memref<1x8x128xf32, #tpu.memory_space<vmem>>) attributes {dimension_semantics = [#tpu.dimension_semantics<parallel>, #tpu.dimension_semantics<parallel>], iteration_bounds = array<i64: 4, 1>, scalar_prefetch = 0 : i64, scratch_operands = 0 : i64, tpu.core_type = #tpu.core_type<tc>, window_params = [{transform_indices = @transform_0, window_bounds = array<i64: 1, 8, 128>}, {transform_indices = @transform_1, window_bounds = array<i64: 1, 128, 128>}, {pipeline_mode = #tpu.pipeline_mode<synchronous>, transform_indices = @transform_2, window_bounds = array<i64: 4, 128>}, {transform_indices = @transform_3, window_bounds = array<i64: 1, 8, 128>}]} {
    %c0 = arith.constant 0 : index
    %c0_0 = arith.constant 0 : index
    %c0_1 = arith.constant 0 : index
    %0 = vector.load %arg2[%c0, %c0_0, %c0_1] : memref<1x8x128xf32, #tpu.memory_space<vmem>>, vector<1x8x128xf32>
    %1 = vector.shape_cast %0 : vector<1x8x128xf32> to vector<8x128xf32>
    %c0_2 = arith.constant 0 : index
    %c0_3 = arith.constant 0 : index
    %c0_4 = arith.constant 0 : index
    %2 = vector.load %arg3[%c0_2, %c0_3, %c0_4] : memref<1x128x128xf32, #tpu.memory_space<vmem>>, vector<1x128x128xf32>
    %3 = vector.shape_cast %2 : vector<1x128x128xf32> to vector<128x128xf32>
    %cst = arith.constant dense<0.000000e+00> : vector<8x128xf32>
    %4 = tpu.matmul %1, %3, %cst {dimension_numbers = #tpu.dot_dimension_numbers<[1], [0], [0], [1], [0, 0, 1, 1], [], []>} : vector<8x128xf32>, vector<128x128xf32>, vector<8x128xf32> -> vector<8x128xf32>
    %5 = arith.index_cast %arg0 : i32 to index
    %c0_5 = arith.constant 0 : index
    %6 = vector.load %arg4[%5, %c0_5] : memref<4x128xf32, #tpu.memory_space<vmem>>, vector<1x128xf32>
    %7 = vector.broadcast %6 : vector<1x128xf32> to vector<8x128xf32>
    %8 = arith.addf %4, %7 : vector<8x128xf32>
    %9 = arith.negf %8 : vector<8x128xf32>
    %10 = math.exp %9 : vector<8x128xf32>
    %cst_6 = arith.constant 1.000000e+00 : f32
    %11 = vector.broadcast %cst_6 : f32 to vector<8x128xf32>
    %12 = arith.addf %11, %10 : vector<8x128xf32>
    %13 = arith.divf %11, %12 : vector<8x128xf32>
    %14 = arith.mulf %8, %13 : vector<8x128xf32>
    %c0_7 = arith.constant 0 : index
    %c0_8 = arith.constant 0 : index
    %c0_9 = arith.constant 0 : index
    %15 = vector.load %arg5[%c0_7, %c0_8, %c0_9] : memref<1x8x128xf32, #tpu.memory_space<vmem>>, vector<1x8x128xf32>
    %16 = vector.shape_cast %15 : vector<1x8x128xf32> to vector<8x128xf32>
    %17 = vector.shape_cast %14 : vector<8x128xf32> to vector<1x8x128xf32>
    tpu.vector_store %arg5[%c0_7, %c0_8, %c0_9], %17 {strides = array<i32>} : memref<1x8x128xf32, #tpu.memory_space<vmem>>, vector<1x8x128xf32>,
    return
  }
  func.func @transform_0(%arg0: i32, %arg1: i32) -> (i32, i32, i32) {
    %c0_i32 = arith.constant 0 : i32
    %c0_i32_0 = arith.constant 0 : i32
    return %arg0, %arg1, %c0_i32 : i32, i32, i32
  }
  func.func @transform_1(%arg0: i32, %arg1: i32) -> (i32, i32, i32) {
    %c0_i32 = arith.constant 0 : i32
    %c0_i32_0 = arith.constant 0 : i32
    %c0_i32_1 = arith.constant 0 : i32
    return %arg0, %c0_i32, %c0_i32_0 : i32, i32, i32
  }
  func.func @transform_2(%arg0: i32, %arg1: i32) -> (i32, i32) {
    %c0_i32 = arith.constant 0 : i32
    %c0_i32_0 = arith.constant 0 : i32
    %c0_i32_1 = arith.constant 0 : i32
    return %c0_i32, %c0_i32_0 : i32, i32
  }
  func.func @transform_3(%arg0: i32, %arg1: i32) -> (i32, i32, i32) {
    %c0_i32 = arith.constant 0 : i32
    %c0_i32_0 = arith.constant 0 : i32
    return %arg0, %arg1, %c0_i32 : i32, i32, i32
  }
}

</mosaic_0001>

<bundles_post_ra>
// kernel: tpu_custom_call.1
= control target key start
LH: loop header
LB: loop body
LE: loop exit
PB: predicated region body
PF: predicated region fallthrough
CT: control target
= control target key end

     0   :  { %s951_s0 = inlined_call_operand.hbm [shape: f32[4,8,128], index: 0, kind: input, shape index: {}]   ;;  %s952_s1 = inlined_call_operand.hbm [shape: f32[4,128,128], index: 1, kind: input, shape index: {}]   ;;  %s953_s2 = inlined_call_operand.hbm [shape: f32[4,128], index: 2, kind: input, shape index: {}]   ;;  %s954_s3 = inlined_call_operand.hbm [shape: f32[4,8,128], index: 3, kind: output, shape index: {}]  }
   0x1   :  { %956 = sst [smem:[#allocation14_spill]] %s951_s0 }
   0x2   :  { %957 = sst [smem:[#allocation15_spill]] %s953_s2 }
   0x3   :  { %8 = vsyncpa [#allocation3], 0 }
   0x4   :  { %10 = vsyncpa [#allocation3 + $0x1], 0 }
   0x5   :  { %11 = vsyncpa [#allocation6], 0 }
   0x6   :  { %13 = vsyncpa [#allocation6 + $0x1], 0 }
   0x7   :  { %14 = vsyncpa [#allocation4], 0 }
   0x8   :  { %16 = vsyncpa [#allocation4 + $0x1], 0  ;;  %s763_s12 = smov 0   ;;  %s765_s13 = smov 0  }
   0x9   :  { %s767_s14 = smov 0   ;;  %s769_s15 = smov 0  }
   0xa   :  { %s771_s16 = smov 0   ;;  %s773_s17 = smov 0  }
   0xb LB: > { %s794_s18 = sadd.s32 4294967295, %s738_s17   ;;  %s453_s19 = sadd.s32 4294967294, %s738_s17   ;;  %s738_s17 = sphi %s773_s17, %s22_s17   ;;  %s734_s16 = sphi %s771_s16, %s972_s16   ;;  %s730_s15 = sphi %s769_s15, %s971_s15   ;;  %s726_s14 = sphi %s767_s14, %s970_s14   ;;  %s722_s13 = sphi %s765_s13, %s969_s13   ;;  %s718_s12 = sphi %s763_s12, %s968_s12  }
   0xc   : > { %p56_p0 = scmp.ne.s32.totalorder %s722_s13, %s718_s12  ;;  %p57_p1 = scmp.eq.s32.totalorder %s794_s18, 0 }
   0xd   : > { %p129_p2 = scmp.eq.s32.totalorder %s794_s18, 3  ;;  %p135_p3 = scmp.eq.s32.totalorder %s453_s19, 3 }
   0xe   : > { %p803_p4 = por %p57_p1, %p56_p0  ;;  %p454_p5 = scmp.ge.s32.totalorder %s738_s17, 1 }
   0xf   : > { %p808_p6 = por %p135_p3, %p56_p0  ;;  %p142_p7 = scmp.lt.s32.totalorder %s738_s17, 5 }
  0x10   : > { %s960_s2 = sld [smem:[#allocation15_spill]]  ;;  %s740_s26 = smov [#allocation7]  }
  0x11   : > { %p816_p8 = pnand %p454_p5, %p142_p7  ;;  %s156_s27 = sshll.u32 %s740_s26, 4  ;;  %s157_s27 = int_to_ptr.vmem [resolvable:$true] %s156_s27 }
  0x12   : > { %s34_s28 = sadd.s32 1, %s734_s16  ;;  %s43_s29 = sadd.s32 1, %s726_s14 }
  0x13   : > { %p483_p9 = pneg %p816_p8  ;;  %p36_p11 = scmp.ge.s32.totalorder %s34_s28, 4 }
  0x14   : > { %p50_p12 = scmp.ne.s32.totalorder %s726_s14, %s722_s13  ;;  %p51_p13 = scmp.eq.s32.totalorder %s738_s17, 0 }
  0x15   : > { %p484_p10 = pnand %p483_p9, %p57_p1  ;;  %s974_s28 = smov (%p36_p11, %s34_s28), 0 }
  0x16   : > { %s154_s24 = sshll.u32 %s960_s2, 4  ;;  %962 = sst [smem:[#allocation13_spill]] %s974_s28  ;;  %s155_s24 = int_to_ptr.hbm [resolvable:$true] %s154_s24 }
  0x17   : > { %486 = dma.hbm_to_vmem [thread:$0]  (!%p484_p10), %s155_s24, 64, %s157_s27, [#allocation6]  }
  0x18   : > { %p831_p0 = por %p51_p13, %p50_p12  ;;  %p837_p3 = por %p129_p2, %p50_p12 }
  0x19   : > { %s38_s5 = ssub.s32 %s734_s16, %s974_s28  ;;  %p499_p5 = scmp.lt.s32.totalorder %s738_s17, 4 }
  0x1a   : > { %p41_p7 = scmp.eq.s32.totalorder %s38_s5, 0  ;;  %s167_s6 = sand.u32 1, %s726_s14  }
  0x1b   : > { %s457_s7 = sshll.u32 %s167_s6, 3  ;;  %s458_s9 = sshll.u32 %s734_s16, 3 }
  0x1c   : > { %s846_s8 = scalar_select %p41_p7, %s726_s14, %s43_s29  }
  0x1d   : > { %s965_s0 = sld [smem:[#allocation14_spill]]  ;;  %s171_s22 = scalar_lea.vmem [#allocation2], %s457_s7 }
  0x1e   : > { %s180_s23 = sshll.u32 %s171_s22, 4  ;;  %p854_p2 = pnand %p499_p5, %p831_p0  ;;  %s181_s23 = int_to_ptr.vmem [resolvable:$true] %s180_s23 }
  0x1f   : > { %s459_s27 = sshll.u32 %s167_s6, 7  ;;  %s472_s29 = sshll.u32 %s734_s16, 7 }
  0x20   : > { %s168_s5 = scalar_lea.sflag [#allocation3], %s167_s6  ;;  %s191_s2 = scalar_lea.vmem [#allocation5], %s459_s27 }
  0x21   : > { %s199_s10 = sshll.u32 %s191_s2, 4  ;;  %s742_s28 = smov 8   ;;  %s200_s10 = int_to_ptr.vmem [resolvable:$true] %s199_s10 }
  0x22   : > { %s870_s6 = sand.u32 (!%p816_p8), 1, %s722_s13  }
  0x23   : > { %s176_s19 = scalar_lea.hbm %s965_s0, %s458_s9  ;;  %s187_s9 = sand.u32 1, %s738_s17  }
  0x24   : > { %s178_s24 = sshll.u32 %s176_s19, 4  ;;  %s196_s19 = scalar_lea.hbm %s952_s1, %s472_s29  ;;  %s179_s24 = int_to_ptr.hbm [resolvable:$true] %s178_s24 }
  0x25   : > { %490 = dma.hbm_to_vmem [thread:$0]  (!%p854_p2), %s179_s24, 128, %s181_s23, %s168_s5  }
  0x26   : > { %s197_s30 = sshll.u32 %s196_s19, 4  ;;  %s188_s22 = scalar_lea.sflag [#allocation6], %s187_s9  ;;  %s198_s30 = int_to_ptr.hbm [resolvable:$true] %s197_s30 }
  0x27   : > { %s741_s0 = smov 128   ;;  %211 = sbr.rel (%p816_p8) target bundleno = 243 (0xf3), region = 32 }
  0x28   : > { %493 = dma.hbm_to_vmem [thread:$0]  (!%p854_p2), %s198_s30, 2048, %s200_s10, %s188_s22, %s741_s0, %s741_s0, %s742_s28  }
  0x29   : > { %s463_s2 = sshll.u32 (!%p816_p8), %s870_s6, 3  ;;  %s214_s23 = scalar_lea.sflag (!%p816_p8), [#allocation3], %s870_s6 }
  0x2a   : > { %s876_s24 = scalar_lea.vmem (!%p816_p8), [#allocation2], %s463_s2 }
  0x2c   : > { %701 = dma.done.wait (%p803_p4), %s214_s23, 128  }
  0x2d   : > { %703 = vsyncadd (%p803_p4), %s214_s23, 4294967168  ;;  %s223_s0 = sand.u32 1, %s794_s18   ;;  %s464_s25 = sshll.u32 %s870_s6, 7 }
  0x2e   : > { %s224_s28 = scalar_lea.sflag [#allocation6], %s223_s0  ;;  %s884_s26 = scalar_lea.vmem [#allocation5], %s464_s25 }
  0x2f   : > { %705 = dma.done.wait (%p803_p4), %s224_s28, 2048  }
  0x30   : > { %707 = vsyncadd (%p803_p4), %s224_s28, 4294965248 }
  0x31   : > { %709 = dma.done.wait (%p57_p1), [#allocation6], 64  }
  0x32   : > { %711 = vsyncadd (%p57_p1), [#allocation6], 4294967232  ;;  %v277_v0 = vld [vmem:[%s884_s26 + $0x78] sm:$0xff]  ;;  %v276_v1 = vld [vmem:[%s884_s26 + $0x70] sm:$0xff]  ;;  %s278_s18 = scalar_lea.vmem [#allocation7], %s730_s15  ;;  %s469_s20 = sshll.u32 %s730_s15, 3 }
  0x33   : > { %281 = vmatpush.msra.mxu0 %v277_v0  ;;  %v275_v2 = vld [vmem:[%s884_s26 + $0x68] sm:$0xff]  ;;  %v274_v3 = vld [vmem:[%s884_s26 + $0x60] sm:$0xff]  ;;  %v273_v4 = vld [vmem:[%s884_s26 + $0x58] sm:$0xff]  ;;  %s334_s5 = scalar_lea.hbm %s954_s3, %s469_s20  ;;  %s260_s10 = scalar_lea.vmem [#allocation8], %s463_s2 }
  0x34   : > { %v272_v5 = vld [vmem:[%s884_s26 + $0x50] sm:$0xff]  ;;  %v271_v6 = vld [vmem:[%s884_s26 + $0x48] sm:$0xff]  ;;  %v270_v7 = vld [vmem:[%s884_s26 + $0x40] sm:$0xff]  ;;  %s336_s9 = sshll.u32 %s260_s10, 4  ;;  %s338_s7 = sshll.u32 %s334_s5, 4  ;;  %s337_s9 = int_to_ptr.vmem [resolvable:$true] %s336_s9  ;;  %s339_s7 = int_to_ptr.hbm [resolvable:$true] %s338_s7 }
  0x35   : > { %282 = vmatpush.msra.mxu0 %v276_v1  ;;  %v269_v8 = vld [vmem:[%s884_s26 + $0x38] sm:$0xff]  ;;  %v268_v9 = vld [vmem:[%s884_s26 + $0x30] sm:$0xff]  ;;  %v267_v10 = vld [vmem:[%s884_s26 + $0x28] sm:$0xff]  ;;  %s323_s15 = scalar_lea.sflag [#allocation4], %s870_s6  ;;  %s662_s11 = sshra.s32 %s339_s7, 4  ;;  %s663_s11 = int_to_ptr.hbm [resolvable:$true] %s662_s11 }
  0x36   : > { %v266_v11 = vld [vmem:[%s884_s26 + $0x20] sm:$0xff]  ;;  %v265_v12 = vld [vmem:[%s884_s26 + $0x18] sm:$0xff]  ;;  %v264_v13 = vld [vmem:[%s884_s26 + $0x10] sm:$0xff]  ;;  %s664_s19 = scalar_lea.hbm %s663_s11, 8  ;;  %s668_s2 = scalar_lea.hbm %s954_s3, 32 }
  0x37   : > { %283 = vmatpush.msra.mxu0 %v275_v2  ;;  %v263_v14 = vld [vmem:[%s884_s26 + $0x8] sm:$0xff]  ;;  %v262_v15 = vld [vmem:[%s884_s26] sm:$0xff]  ;;  %v261_v16 = vld [vmem:[%s876_s24] sm:$0xff]  ;;  %p665_p1 = scmp.ne.s32.totalorder %s663_s11, %s664_s19  ;;  %p669_p9 = scmp.lt.s32.totalorder %s663_s11, %s954_s3 }
  0x38   : > { %v553_v17 = vld [vmem:[%s278_s18] ss:$0 sm:$0xff]  ;;  %p670_p10 = scmp.lt.s32.totalorder %s668_s2, %s664_s19 }
  0x39   : > { %284 = vmatpush.msra.mxu0 %v274_v3  ;;  %p666_p4 = pnand %p665_p1, %p837_p3 }
  0x3a   : > { %p671_p11 = por %p670_p10, %p669_p9 }
  0x3b   : > { %285 = vmatpush.msra.mxu0 %v273_v4  ;;  %p667_p8 = pneg %p666_p4 }
  0x3d   : > { %286 = vmatpush.msra.mxu0 %v272_v5  ;;  %p672_p12 = pnand %p671_p11, %p667_p8 }
  0x3f   : > { %287 = vmatpush.msra.mxu0 %v271_v6 }
  0x41   : > { %288 = vmatpush.msra.mxu0 %v270_v7 }
  0x43   : > { %289 = vmatpush.msra.mxu0 %v269_v8 }
  0x45   : > { %290 = vmatpush.msra.mxu0 %v268_v9 }
  0x47   : > { %291 = vmatpush.msra.mxu0 %v267_v10 }
  0x49   : > { %292 = vmatpush.msra.mxu0 %v266_v11 }
  0x4b   : > { %293 = vmatpush.msra.mxu0 %v265_v12 }
  0x4d   : > { %294 = vmatpush.msra.mxu0 %v264_v13 }
  0x4f   : > { %295 = vmatpush.msra.mxu0 %v263_v14 }
  0x51   : > { %296 = vmatpush.msra.mxu0 %v262_v15 }
  0x52   : > { %297 = vmatmul.f32.vlgmr.msra.gmra.mxu0 %v261_v16 }
  0xcf   : > { %v298_v18 = vpop.f32.mrf.mxu0 }
  0xd0   : > { %v299_v19 = vadd.f32 %v553_v17, %v298_v18 }
  0xd2   : > { %v467_v20 = vmul.f32 -1.442695, %v299_v19 }
  0xd4   : > { %554 = vpow2.f32 %v467_v20 }
  0xda   : > { %v555_v21 = vpop.eup %554 }
  0xdb   : > { %v304_v22 = vadd.f32 1.0, %v555_v21 }
  0xdd   : > { %556 = vrcp.f32 %v304_v22  ;;  %v316_v26 = vand.u32 2147483648, %v304_v22  ;;  %v314_v28 = vand.u32 2147483647, %v304_v22  ;;  %vm310_vm1 = vweird.f32 %v304_v22 }
  0xdf   : > { %v317_v30 = vor.u32 1.1754944e-38, %v316_v26  ;;  %vm315_vm3 = vcmp.eq.f32.partialorder %v314_v28, 8.507059e+37 }
  0xe3   : > { %v557_v23 = vpop.eup %556 }
  0xe4   : > { %v306_v24 = vmul.f32 %v557_v23, %v304_v22  ;;  %vm311_vm0 = vweird.f32 %v557_v23 }
  0xe5   : > { %vm312_vm2 = vmor %vm310_vm1, %vm311_vm0 }
  0xe6   : > { %v307_v25 = vsub.f32 1.0, %v306_v24 }
  0xe8   : > { %v308_v27 = vmul.f32 %v557_v23, %v307_v25 }
  0xea   : > { %v309_v29 = vadd.f32 %v557_v23, %v308_v27 }
  0xec   : > { %v313_v31 = vsel %vm312_vm2, %v557_v23, %v309_v29 }
  0xed   : > { %v318_v32 = vsel %vm315_vm3, %v317_v30, %v313_v31 }
  0xee   : > { %v320_v33 = vmul.f32 %v318_v32, %v299_v19 }
  0xf0   : > { %321 = vst [vmem:[%s260_s10] sm:$0xff] %v320_v33 }
  0xf1   : > { %675 = shalt.err (!%p672_p12)
}
  0xf2   : > { %481 = dma.vmem_to_hbm [thread:$0]  (%p837_p3), %s337_s9, 128, %s339_s7, %s323_s15  }
  0xf3 PF: > { %p501_p13 = scmp.ge.s32.totalorder %s738_s17, 2  ;;  %s350_s6 = sand.u32 1, %s718_s12  }
  0xf4   : > { %s351_s0 = scalar_lea.sflag [#allocation4], %s350_s6 }
  0xf5   : > { %p495_p0 = pnand %p501_p13, %p808_p6 }
  0xf7   : > { %p496_p5 = pneg %p495_p0 }
  0xf9   : > { %713 = dma.done.wait (%p496_p5), %s351_s0, 128  }
  0xfa   : > { %715 = vsyncadd (%p496_p5), %s351_s0, 4294967168  ;;  %s22_s17 = sadd.s32 1, %s738_s17   ;;  %s967_s4 = sld [smem:[#allocation13_spill]] }
  0xfb   : > { %p19_p7 = scmp.ge.s32.totalorder %s22_s17, 6   ;;  %s968_s12 = smov %s722_s13 }
  0xfc   : > { %s969_s13 = smov %s726_s14  ;;  %s970_s14 = smov %s846_s8 }
  0xfd   : > { %s971_s15 = smov %s734_s16  ;;  %21 = sbr.rel (!%p19_p7) target bundleno = 11 (0xb), region = 95 }
 0x100   : > { %s972_s16 = smov %s967_s4 }
 0x102   :  { %357 = vsyncpa [#allocation3], 1 }
 0x103   :  { %359 = vsyncpa [#allocation3 + $0x1], 1 }
 0x104   :  { %360 = vsyncpa [#allocation6], 1 }
 0x105   :  { %362 = vsyncpa [#allocation6 + $0x1], 1 }
 0x106   :  { %363 = vsyncpa [#allocation4], 1 }
 0x107   :  { %365 = vsyncpa [#allocation4 + $0x1], 1 }

</bundles_post_ra>
